<compile_context>
chip_gen: v5e
topology: v5e:2x2
jax: 0.10.0
libtpu: 0.0.40
codegen_flags: <defaults>
</compile_context>

<pallas_src>
import numpy as np
import jax
import jax.numpy as jnp
from jax import lax
from jax.experimental import pallas as pl
from jax.experimental.pallas import tpu as pltpu

LEVELS = (8, 8, 6, 5, 5, 4)      # codebook_dim = dim = 6
COMMIT_W = 0.1
QUANT_W = 0.1
EPS = 1e-3


def _values_per_latent(levels):
    """Deterministic default init from LatentQuantize.__init__ (used by the reference)."""
    vals = []
    for n in levels:
        if n % 2 == 1:
            vals.append(np.linspace(-1.0, 1.0, n).astype(np.float32))
        else:
            vals.append((np.arange(n) / (n // 2) - 1.0).astype(np.float32))
    return vals


def _channel_constants(levels):
    """Per-channel constants of bound()/quantize()/codes_to_indices() as python floats."""
    lv = np.asarray(levels, dtype=np.int64)
    lvf = lv.astype(np.float64)
    half_l = (lvf - 1.0) * (1.0 + EPS) / 2.0
    offset = np.where(lv % 2 == 0, 0.5, 0.0)
    shift = np.arctanh(offset / half_l)
    # values_per_latent spacing: even n -> 1/(n//2); odd n -> 2/(n-1); v0 = -1 for both.
    inv_step = np.where(lv % 2 == 0, lvf / 2.0, (lvf - 1.0) / 2.0)
    step = 1.0 / inv_step
    nmax = lvf - 1.0
    basis = np.cumprod(np.concatenate([[1.0], lvf[:-1]]))
    as_f32 = lambda a: tuple(float(np.float32(v)) for v in a)
    return {
        "half_l": as_f32(half_l), "offset": as_f32(offset), "shift": as_f32(shift),
        "inv_step": as_f32(inv_step), "step": as_f32(step), "nmax": as_f32(nmax),
        "basis": as_f32(basis),
    }


def latent_quantize_forward(z_nchw, *, max_lane_tile=16384, target_block_bytes=1 << 20):
    B, D, H, W = z_nchw.shape
    assert D == len(LEVELS), "dim must equal len(levels) (no-projection config)"
    HW = H * W
    cc = _channel_constants(LEVELS)

    # ---- tile selection: channel-major blocks [b_tile, D, tile_t] ----------------
    if HW <= max_lane_tile:
        tile_t = HW                                   # full row (== full dim, any size OK)
    else:
        tile_t = HW                                   # fallback: whole row
        t = (max_lane_tile // 128) * 128
        while t >= 128:
            if HW % t == 0:                           # multiple of 128 that divides H*W
                tile_t = t
                break
            t -= 128
    cap = max(1, target_block_bytes // (D * tile_t * 4))
    b_tile = 1
    for cand in range(min(B, cap), 0, -1):            # largest divisor of B under the cap
        if B % cand == 0:
            b_tile = cand
            break
    grid = (B // b_tile, HW // tile_t)

    def kernel(z_ref, out_ref, idx_ref, sq_ref):
        # Per-channel constant columns [1, D, 1], built from one shared iota and
        # python-float selects (no captured array constants, no extra DMAs).
        d_iota = lax.broadcasted_iota(jnp.int32, (1, D, 1), 1)

        def col(vals):
            out = jnp.full((1, D, 1), vals[0], dtype=jnp.float32)
            for k in range(1, D):
                out = jnp.where(d_iota == k, vals[k], out)
            return out

        shift = col(cc["shift"])
        half_l = col(cc["half_l"])
        offset = col(cc["offset"])
        inv_step = col(cc["inv_step"])
        step = col(cc["step"])
        nmax = col(cc["nmax"])
        basis = col(cc["basis"])

        z = z_ref[...]                                      # [b_tile, D, tile_t] f32

        # --- bound() ---
        zb = jnp.tanh(z + shift) * half_l - offset

        # --- quantize(): uniform grid starting at -1 with spacing `step` =>
        #     nearest neighbour == clipped round-to-grid; j is the per-dim level index.
        j = jnp.clip(jnp.round((zb + 1.0) * inv_step), 0.0, nmax)
        codes = j * step - 1.0                              # STE forward value
        out_ref[...] = codes                                # no projections: out == codes

        # --- codes_to_indices(): round(code*hw + hw) == j exactly ---
        idx = jnp.sum(j * basis, axis=1, keepdims=True)     # exact integers (< 2^24)
        idx_ref[...] = idx.astype(jnp.int32)                # [b_tile, 1, tile_t]

        # --- per-block partial squared error for the MSE losses ---
        e = zb - codes
        e2 = e * e
        part = jnp.sum(e2, axis=2, keepdims=True)           # lane reduce
        part = jnp.sum(part, axis=1, keepdims=True)         # sublane reduce
        part = jnp.sum(part, axis=0, keepdims=True)         # (1, 1, 1)
        sq_ref[0] = part

    # [B, D, H, W] -> [B, D, H*W]: contiguous reshape, no transpose / extra HBM pass.
    z3 = z_nchw.astype(jnp.float32).reshape(B, D, HW)

    codes3, idx3, sq = pl.pallas_call(
        kernel,
        out_shape=(
            jax.ShapeDtypeStruct((B, D, HW), jnp.float32),
            jax.ShapeDtypeStruct((B, 1, HW), jnp.int32),
            jax.ShapeDtypeStruct((grid[0], grid[1], 1, 1), jnp.float32),
        ),
        grid=grid,
        in_specs=[pl.BlockSpec((b_tile, D, tile_t), lambda b, t: (b, 0, t))],
        out_specs=(
            pl.BlockSpec((b_tile, D, tile_t), lambda b, t: (b, 0, t)),
            pl.BlockSpec((b_tile, 1, tile_t), lambda b, t: (b, 0, t)),
            pl.BlockSpec((1, 1, 1, 1), lambda b, t: (b, t, 0, 0)),
        ),
        compiler_params=pltpu.CompilerParams(
            dimension_semantics=("parallel", "parallel")),
    )(z3)

    out = codes3.reshape(B, D, H, W)                        # free reshapes
    indices = idx3.reshape(B, H, W)
    mse = jnp.sum(sq) / (B * D * H * W)
    # training-mode losses: commitment & quantization MSE are numerically equal here
    loss = COMMIT_W * mse + QUANT_W * mse
    return out, indices, loss


def reference_forward(z_nchw):
    """Pure-JAX reference mirroring the PyTorch forward (no projections)."""
    B, D, H, W = z_nchw.shape
    levels = jnp.asarray(LEVELS, jnp.int32)
    half_l = (levels - 1).astype(jnp.float32) * (1.0 + EPS) / 2.0
    offset = jnp.where(levels % 2 == 0, 0.5, 0.0).astype(jnp.float32)
    shift = jnp.arctanh(offset / half_l)
    zt = jnp.transpose(z_nchw, (0, 2, 3, 1))
    zb = jnp.tanh(zt + shift) * half_l - offset
    vals_list = _values_per_latent(LEVELS)
    codes_dims = []
    for i in range(D):
        v = jnp.asarray(vals_list[i])
        dist = jnp.abs(zb[..., i, None] - v)
        jidx = jnp.argmin(dist, axis=-1)                    # first-min tie break, like torch
        codes_dims.append(v[jidx])
    codes = jnp.stack(codes_dims, axis=-1)
    hw = (levels // 2).astype(jnp.float32)
    basis = jnp.asarray(
        np.cumprod(np.concatenate([[1], np.asarray(LEVELS)[:-1]])).astype(np.int32))
    indices = jnp.sum(jnp.round(codes * hw + hw).astype(jnp.int32) * basis, axis=-1)
    out = jnp.transpose(codes, (0, 3, 1, 2))
    zb_nchw = jnp.transpose(zb, (0, 3, 1, 2))
    mse = jnp.mean((zb_nchw - out) ** 2)
    return out, indices, COMMIT_W * mse + QUANT_W * mse


if __name__ == "__main__":
    key = jax.random.PRNGKey(0)
    B, D, H, W = 2, len(LEVELS), 16, 16
    z = jax.random.normal(key, (B, D, H, W), dtype=jnp.float32)

    out, indices, loss = latent_quantize_forward(z)
    jax.block_until_ready((out, indices, loss))

    out_ref, idx_ref, loss_ref = reference_forward(z)
    np.testing.assert_allclose(np.asarray(out), np.asarray(out_ref),
                               rtol=1e-5, atol=1e-5)
    np.testing.assert_array_equal(np.asarray(indices), np.asarray(idx_ref))
    np.testing.assert_allclose(float(loss), float(loss_ref), rtol=1e-5, atol=1e-5)

    print("KERNEL_OK")
</pallas_src>

<mosaic_0001>
module attributes {stable_mosaic.version = 11 : i64} {
  func.func @kernel(%arg0: i32, %arg1: i32, %arg2: memref<2x6x256xf32, #tpu.memory_space<vmem>>, %arg3: memref<2x6x256xf32, #tpu.memory_space<vmem>>, %arg4: memref<2x1x256xi32, #tpu.memory_space<vmem>>, %arg5: memref<1x1x1x1xf32, #tpu.memory_space<vmem>>) attributes {dimension_semantics = [#tpu.dimension_semantics<parallel>, #tpu.dimension_semantics<parallel>], iteration_bounds = array<i64: 1, 1>, scalar_prefetch = 0 : i64, scratch_operands = 0 : i64, tpu.core_type = #tpu.core_type<tc>, window_params = [{transform_indices = @transform_0, window_bounds = array<i64: 2, 6, 256>}, {transform_indices = @transform_1, window_bounds = array<i64: 2, 6, 256>}, {transform_indices = @transform_2, window_bounds = array<i64: 2, 1, 256>}, {transform_indices = @transform_3, window_bounds = array<i64: 1, 1, 1, 1>}]} {
    %0 = tpu.iota {dimensions = array<i32: 1>} : vector<1x6x1xi32>
    %cst = arith.constant 0.143695354 : f32
    %1 = vector.broadcast %cst : f32 to vector<1x6x1xf32>
    %c1_i32 = arith.constant 1 : i32
    %2 = vector.broadcast %c1_i32 : i32 to vector<1x6x1xi32>
    %3 = arith.cmpi eq, %0, %2 : vector<1x6x1xi32>
    %cst_0 = arith.constant 0.143695354 : f32
    %4 = vector.broadcast %cst_0 : f32 to vector<1x6x1xf32>
    %5 = arith.select %3, %4, %1 : vector<1x6x1xi1>, vector<1x6x1xf32>
    %c2_i32 = arith.constant 2 : i32
    %6 = vector.broadcast %c2_i32 : i32 to vector<1x6x1xi32>
    %7 = arith.cmpi eq, %0, %6 : vector<1x6x1xi32>
    %cst_1 = arith.constant 0.202524439 : f32
    %8 = vector.broadcast %cst_1 : f32 to vector<1x6x1xf32>
    %9 = arith.select %7, %8, %5 : vector<1x6x1xi1>, vector<1x6x1xf32>
    %c3_i32 = arith.constant 3 : i32
    %10 = vector.broadcast %c3_i32 : i32 to vector<1x6x1xi32>
    %11 = arith.cmpi eq, %0, %10 : vector<1x6x1xi32>
    %cst_2 = arith.constant 0.000000e+00 : f32
    %12 = vector.broadcast %cst_2 : f32 to vector<1x6x1xf32>
    %13 = arith.select %11, %12, %9 : vector<1x6x1xi1>, vector<1x6x1xf32>
    %c4_i32 = arith.constant 4 : i32
    %14 = vector.broadcast %c4_i32 : i32 to vector<1x6x1xi32>
    %15 = arith.cmpi eq, %0, %14 : vector<1x6x1xi32>
    %cst_3 = arith.constant 0.000000e+00 : f32
    %16 = vector.broadcast %cst_3 : f32 to vector<1x6x1xf32>
    %17 = arith.select %15, %16, %13 : vector<1x6x1xi1>, vector<1x6x1xf32>
    %c5_i32 = arith.constant 5 : i32
    %18 = vector.broadcast %c5_i32 : i32 to vector<1x6x1xi32>
    %19 = arith.cmpi eq, %0, %18 : vector<1x6x1xi32>
    %cst_4 = arith.constant 3.461990e-01 : f32
    %20 = vector.broadcast %cst_4 : f32 to vector<1x6x1xf32>
    %21 = arith.select %19, %20, %17 : vector<1x6x1xi1>, vector<1x6x1xf32>
    %cst_5 = arith.constant 3.503500e+00 : f32
    %22 = vector.broadcast %cst_5 : f32 to vector<1x6x1xf32>
    %c1_i32_6 = arith.constant 1 : i32
    %23 = vector.broadcast %c1_i32_6 : i32 to vector<1x6x1xi32>
    %24 = arith.cmpi eq, %0, %23 : vector<1x6x1xi32>
    %cst_7 = arith.constant 3.503500e+00 : f32
    %25 = vector.broadcast %cst_7 : f32 to vector<1x6x1xf32>
    %26 = arith.select %24, %25, %22 : vector<1x6x1xi1>, vector<1x6x1xf32>
    %c2_i32_8 = arith.constant 2 : i32
    %27 = vector.broadcast %c2_i32_8 : i32 to vector<1x6x1xi32>
    %28 = arith.cmpi eq, %0, %27 : vector<1x6x1xi32>
    %cst_9 = arith.constant 2.502500e+00 : f32
    %29 = vector.broadcast %cst_9 : f32 to vector<1x6x1xf32>
    %30 = arith.select %28, %29, %26 : vector<1x6x1xi1>, vector<1x6x1xf32>
    %c3_i32_10 = arith.constant 3 : i32
    %31 = vector.broadcast %c3_i32_10 : i32 to vector<1x6x1xi32>
    %32 = arith.cmpi eq, %0, %31 : vector<1x6x1xi32>
    %cst_11 = arith.constant 2.002000e+00 : f32
    %33 = vector.broadcast %cst_11 : f32 to vector<1x6x1xf32>
    %34 = arith.select %32, %33, %30 : vector<1x6x1xi1>, vector<1x6x1xf32>
    %c4_i32_12 = arith.constant 4 : i32
    %35 = vector.broadcast %c4_i32_12 : i32 to vector<1x6x1xi32>
    %36 = arith.cmpi eq, %0, %35 : vector<1x6x1xi32>
    %cst_13 = arith.constant 2.002000e+00 : f32
    %37 = vector.broadcast %cst_13 : f32 to vector<1x6x1xf32>
    %38 = arith.select %36, %37, %34 : vector<1x6x1xi1>, vector<1x6x1xf32>
    %c5_i32_14 = arith.constant 5 : i32
    %39 = vector.broadcast %c5_i32_14 : i32 to vector<1x6x1xi32>
    %40 = arith.cmpi eq, %0, %39 : vector<1x6x1xi32>
    %cst_15 = arith.constant 1.501500e+00 : f32
    %41 = vector.broadcast %cst_15 : f32 to vector<1x6x1xf32>
    %42 = arith.select %40, %41, %38 : vector<1x6x1xi1>, vector<1x6x1xf32>
    %cst_16 = arith.constant 5.000000e-01 : f32
    %43 = vector.broadcast %cst_16 : f32 to vector<1x6x1xf32>
    %c1_i32_17 = arith.constant 1 : i32
    %44 = vector.broadcast %c1_i32_17 : i32 to vector<1x6x1xi32>
    %45 = arith.cmpi eq, %0, %44 : vector<1x6x1xi32>
    %cst_18 = arith.constant 5.000000e-01 : f32
    %46 = vector.broadcast %cst_18 : f32 to vector<1x6x1xf32>
    %47 = arith.select %45, %46, %43 : vector<1x6x1xi1>, vector<1x6x1xf32>
    %c2_i32_19 = arith.constant 2 : i32
    %48 = vector.broadcast %c2_i32_19 : i32 to vector<1x6x1xi32>
    %49 = arith.cmpi eq, %0, %48 : vector<1x6x1xi32>
    %cst_20 = arith.constant 5.000000e-01 : f32
    %50 = vector.broadcast %cst_20 : f32 to vector<1x6x1xf32>
    %51 = arith.select %49, %50, %47 : vector<1x6x1xi1>, vector<1x6x1xf32>
    %c3_i32_21 = arith.constant 3 : i32
    %52 = vector.broadcast %c3_i32_21 : i32 to vector<1x6x1xi32>
    %53 = arith.cmpi eq, %0, %52 : vector<1x6x1xi32>
    %cst_22 = arith.constant 0.000000e+00 : f32
    %54 = vector.broadcast %cst_22 : f32 to vector<1x6x1xf32>
    %55 = arith.select %53, %54, %51 : vector<1x6x1xi1>, vector<1x6x1xf32>
    %c4_i32_23 = arith.constant 4 : i32
    %56 = vector.broadcast %c4_i32_23 : i32 to vector<1x6x1xi32>
    %57 = arith.cmpi eq, %0, %56 : vector<1x6x1xi32>
    %cst_24 = arith.constant 0.000000e+00 : f32
    %58 = vector.broadcast %cst_24 : f32 to vector<1x6x1xf32>
    %59 = arith.select %57, %58, %55 : vector<1x6x1xi1>, vector<1x6x1xf32>
    %c5_i32_25 = arith.constant 5 : i32
    %60 = vector.broadcast %c5_i32_25 : i32 to vector<1x6x1xi32>
    %61 = arith.cmpi eq, %0, %60 : vector<1x6x1xi32>
    %cst_26 = arith.constant 5.000000e-01 : f32
    %62 = vector.broadcast %cst_26 : f32 to vector<1x6x1xf32>
    %63 = arith.select %61, %62, %59 : vector<1x6x1xi1>, vector<1x6x1xf32>
    %cst_27 = arith.constant 4.000000e+00 : f32
    %64 = vector.broadcast %cst_27 : f32 to vector<1x6x1xf32>
    %c1_i32_28 = arith.constant 1 : i32
    %65 = vector.broadcast %c1_i32_28 : i32 to vector<1x6x1xi32>
    %66 = arith.cmpi eq, %0, %65 : vector<1x6x1xi32>
    %cst_29 = arith.constant 4.000000e+00 : f32
    %67 = vector.broadcast %cst_29 : f32 to vector<1x6x1xf32>
    %68 = arith.select %66, %67, %64 : vector<1x6x1xi1>, vector<1x6x1xf32>
    %c2_i32_30 = arith.constant 2 : i32
    %69 = vector.broadcast %c2_i32_30 : i32 to vector<1x6x1xi32>
    %70 = arith.cmpi eq, %0, %69 : vector<1x6x1xi32>
    %cst_31 = arith.constant 3.000000e+00 : f32
    %71 = vector.broadcast %cst_31 : f32 to vector<1x6x1xf32>
    %72 = arith.select %70, %71, %68 : vector<1x6x1xi1>, vector<1x6x1xf32>
    %c3_i32_32 = arith.constant 3 : i32
    %73 = vector.broadcast %c3_i32_32 : i32 to vector<1x6x1xi32>
    %74 = arith.cmpi eq, %0, %73 : vector<1x6x1xi32>
    %cst_33 = arith.constant 2.000000e+00 : f32
    %75 = vector.broadcast %cst_33 : f32 to vector<1x6x1xf32>
    %76 = arith.select %74, %75, %72 : vector<1x6x1xi1>, vector<1x6x1xf32>
    %c4_i32_34 = arith.constant 4 : i32
    %77 = vector.broadcast %c4_i32_34 : i32 to vector<1x6x1xi32>
    %78 = arith.cmpi eq, %0, %77 : vector<1x6x1xi32>
    %cst_35 = arith.constant 2.000000e+00 : f32
    %79 = vector.broadcast %cst_35 : f32 to vector<1x6x1xf32>
    %80 = arith.select %78, %79, %76 : vector<1x6x1xi1>, vector<1x6x1xf32>
    %c5_i32_36 = arith.constant 5 : i32
    %81 = vector.broadcast %c5_i32_36 : i32 to vector<1x6x1xi32>
    %82 = arith.cmpi eq, %0, %81 : vector<1x6x1xi32>
    %cst_37 = arith.constant 2.000000e+00 : f32
    %83 = vector.broadcast %cst_37 : f32 to vector<1x6x1xf32>
    %84 = arith.select %82, %83, %80 : vector<1x6x1xi1>, vector<1x6x1xf32>
    %cst_38 = arith.constant 2.500000e-01 : f32
    %85 = vector.broadcast %cst_38 : f32 to vector<1x6x1xf32>
    %c1_i32_39 = arith.constant 1 : i32
    %86 = vector.broadcast %c1_i32_39 : i32 to vector<1x6x1xi32>
    %87 = arith.cmpi eq, %0, %86 : vector<1x6x1xi32>
    %cst_40 = arith.constant 2.500000e-01 : f32
    %88 = vector.broadcast %cst_40 : f32 to vector<1x6x1xf32>
    %89 = arith.select %87, %88, %85 : vector<1x6x1xi1>, vector<1x6x1xf32>
    %c2_i32_41 = arith.constant 2 : i32
    %90 = vector.broadcast %c2_i32_41 : i32 to vector<1x6x1xi32>
    %91 = arith.cmpi eq, %0, %90 : vector<1x6x1xi32>
    %cst_42 = arith.constant 0.333333343 : f32
    %92 = vector.broadcast %cst_42 : f32 to vector<1x6x1xf32>
    %93 = arith.select %91, %92, %89 : vector<1x6x1xi1>, vector<1x6x1xf32>
    %c3_i32_43 = arith.constant 3 : i32
    %94 = vector.broadcast %c3_i32_43 : i32 to vector<1x6x1xi32>
    %95 = arith.cmpi eq, %0, %94 : vector<1x6x1xi32>
    %cst_44 = arith.constant 5.000000e-01 : f32
    %96 = vector.broadcast %cst_44 : f32 to vector<1x6x1xf32>
    %97 = arith.select %95, %96, %93 : vector<1x6x1xi1>, vector<1x6x1xf32>
    %c4_i32_45 = arith.constant 4 : i32
    %98 = vector.broadcast %c4_i32_45 : i32 to vector<1x6x1xi32>
    %99 = arith.cmpi eq, %0, %98 : vector<1x6x1xi32>
    %cst_46 = arith.constant 5.000000e-01 : f32
    %100 = vector.broadcast %cst_46 : f32 to vector<1x6x1xf32>
    %101 = arith.select %99, %100, %97 : vector<1x6x1xi1>, vector<1x6x1xf32>
    %c5_i32_47 = arith.constant 5 : i32
    %102 = vector.broadcast %c5_i32_47 : i32 to vector<1x6x1xi32>
    %103 = arith.cmpi eq, %0, %102 : vector<1x6x1xi32>
    %cst_48 = arith.constant 5.000000e-01 : f32
    %104 = vector.broadcast %cst_48 : f32 to vector<1x6x1xf32>
    %105 = arith.select %103, %104, %101 : vector<1x6x1xi1>, vector<1x6x1xf32>
    %cst_49 = arith.constant 7.000000e+00 : f32
    %106 = vector.broadcast %cst_49 : f32 to vector<1x6x1xf32>
    %c1_i32_50 = arith.constant 1 : i32
    %107 = vector.broadcast %c1_i32_50 : i32 to vector<1x6x1xi32>
    %108 = arith.cmpi eq, %0, %107 : vector<1x6x1xi32>
    %cst_51 = arith.constant 7.000000e+00 : f32
    %109 = vector.broadcast %cst_51 : f32 to vector<1x6x1xf32>
    %110 = arith.select %108, %109, %106 : vector<1x6x1xi1>, vector<1x6x1xf32>
    %c2_i32_52 = arith.constant 2 : i32
    %111 = vector.broadcast %c2_i32_52 : i32 to vector<1x6x1xi32>
    %112 = arith.cmpi eq, %0, %111 : vector<1x6x1xi32>
    %cst_53 = arith.constant 5.000000e+00 : f32
    %113 = vector.broadcast %cst_53 : f32 to vector<1x6x1xf32>
    %114 = arith.select %112, %113, %110 : vector<1x6x1xi1>, vector<1x6x1xf32>
    %c3_i32_54 = arith.constant 3 : i32
    %115 = vector.broadcast %c3_i32_54 : i32 to vector<1x6x1xi32>
    %116 = arith.cmpi eq, %0, %115 : vector<1x6x1xi32>
    %cst_55 = arith.constant 4.000000e+00 : f32
    %117 = vector.broadcast %cst_55 : f32 to vector<1x6x1xf32>
    %118 = arith.select %116, %117, %114 : vector<1x6x1xi1>, vector<1x6x1xf32>
    %c4_i32_56 = arith.constant 4 : i32
    %119 = vector.broadcast %c4_i32_56 : i32 to vector<1x6x1xi32>
    %120 = arith.cmpi eq, %0, %119 : vector<1x6x1xi32>
    %cst_57 = arith.constant 4.000000e+00 : f32
    %121 = vector.broadcast %cst_57 : f32 to vector<1x6x1xf32>
    %122 = arith.select %120, %121, %118 : vector<1x6x1xi1>, vector<1x6x1xf32>
    %c5_i32_58 = arith.constant 5 : i32
    %123 = vector.broadcast %c5_i32_58 : i32 to vector<1x6x1xi32>
    %124 = arith.cmpi eq, %0, %123 : vector<1x6x1xi32>
    %cst_59 = arith.constant 3.000000e+00 : f32
    %125 = vector.broadcast %cst_59 : f32 to vector<1x6x1xf32>
    %126 = arith.select %124, %125, %122 : vector<1x6x1xi1>, vector<1x6x1xf32>
    %cst_60 = arith.constant 1.000000e+00 : f32
    %127 = vector.broadcast %cst_60 : f32 to vector<1x6x1xf32>
    %c1_i32_61 = arith.constant 1 : i32
    %128 = vector.broadcast %c1_i32_61 : i32 to vector<1x6x1xi32>
    %129 = arith.cmpi eq, %0, %128 : vector<1x6x1xi32>
    %cst_62 = arith.constant 8.000000e+00 : f32
    %130 = vector.broadcast %cst_62 : f32 to vector<1x6x1xf32>
    %131 = arith.select %129, %130, %127 : vector<1x6x1xi1>, vector<1x6x1xf32>
    %c2_i32_63 = arith.constant 2 : i32
    %132 = vector.broadcast %c2_i32_63 : i32 to vector<1x6x1xi32>
    %133 = arith.cmpi eq, %0, %132 : vector<1x6x1xi32>
    %cst_64 = arith.constant 6.400000e+01 : f32
    %134 = vector.broadcast %cst_64 : f32 to vector<1x6x1xf32>
    %135 = arith.select %133, %134, %131 : vector<1x6x1xi1>, vector<1x6x1xf32>
    %c3_i32_65 = arith.constant 3 : i32
    %136 = vector.broadcast %c3_i32_65 : i32 to vector<1x6x1xi32>
    %137 = arith.cmpi eq, %0, %136 : vector<1x6x1xi32>
    %cst_66 = arith.constant 3.840000e+02 : f32
    %138 = vector.broadcast %cst_66 : f32 to vector<1x6x1xf32>
    %139 = arith.select %137, %138, %135 : vector<1x6x1xi1>, vector<1x6x1xf32>
    %c4_i32_67 = arith.constant 4 : i32
    %140 = vector.broadcast %c4_i32_67 : i32 to vector<1x6x1xi32>
    %141 = arith.cmpi eq, %0, %140 : vector<1x6x1xi32>
    %cst_68 = arith.constant 1.920000e+03 : f32
    %142 = vector.broadcast %cst_68 : f32 to vector<1x6x1xf32>
    %143 = arith.select %141, %142, %139 : vector<1x6x1xi1>, vector<1x6x1xf32>
    %c5_i32_69 = arith.constant 5 : i32
    %144 = vector.broadcast %c5_i32_69 : i32 to vector<1x6x1xi32>
    %145 = arith.cmpi eq, %0, %144 : vector<1x6x1xi32>
    %cst_70 = arith.constant 9.600000e+03 : f32
    %146 = vector.broadcast %cst_70 : f32 to vector<1x6x1xf32>
    %147 = arith.select %145, %146, %143 : vector<1x6x1xi1>, vector<1x6x1xf32>
    %c0 = arith.constant 0 : index
    %c0_71 = arith.constant 0 : index
    %c0_72 = arith.constant 0 : index
    %148 = vector.load %arg2[%c0, %c0_71, %c0_72] : memref<2x6x256xf32, #tpu.memory_space<vmem>>, vector<2x6x256xf32>
    %149 = vector.broadcast %21 : vector<1x6x1xf32> to vector<2x6x256xf32>
    %150 = arith.addf %148, %149 : vector<2x6x256xf32>
    %151 = math.tanh %150 : vector<2x6x256xf32>
    %152 = vector.broadcast %42 : vector<1x6x1xf32> to vector<2x6x256xf32>
    %153 = arith.mulf %151, %152 : vector<2x6x256xf32>
    %154 = vector.broadcast %63 : vector<1x6x1xf32> to vector<2x6x256xf32>
    %155 = arith.subf %153, %154 : vector<2x6x256xf32>
    %cst_73 = arith.constant 1.000000e+00 : f32
    %156 = vector.broadcast %cst_73 : f32 to vector<2x6x256xf32>
    %157 = arith.addf %155, %156 : vector<2x6x256xf32>
    %158 = vector.broadcast %84 : vector<1x6x1xf32> to vector<2x6x256xf32>
    %159 = arith.mulf %157, %158 : vector<2x6x256xf32>
    %160 = math.roundeven %159 : vector<2x6x256xf32>
    %cst_74 = arith.constant 0.000000e+00 : f32
    %161 = vector.broadcast %cst_74 : f32 to vector<2x6x256xf32>
    %162 = arith.maximumf %161, %160 : vector<2x6x256xf32>
    %163 = vector.broadcast %126 : vector<1x6x1xf32> to vector<2x6x256xf32>
    %164 = arith.minimumf %163, %162 : vector<2x6x256xf32>
    %165 = vector.broadcast %105 : vector<1x6x1xf32> to vector<2x6x256xf32>
    %166 = arith.mulf %164, %165 : vector<2x6x256xf32>
    %cst_75 = arith.constant 1.000000e+00 : f32
    %167 = vector.broadcast %cst_75 : f32 to vector<2x6x256xf32>
    %168 = arith.subf %166, %167 : vector<2x6x256xf32>
    %c0_76 = arith.constant 0 : index
    %c0_77 = arith.constant 0 : index
    %c0_78 = arith.constant 0 : index
    %169 = vector.load %arg3[%c0_76, %c0_77, %c0_78] : memref<2x6x256xf32, #tpu.memory_space<vmem>>, vector<2x6x256xf32>
    tpu.vector_store %arg3[%c0_76, %c0_77, %c0_78], %168 {strides = array<i32>} : memref<2x6x256xf32, #tpu.memory_space<vmem>>, vector<2x6x256xf32>,
    %170 = vector.broadcast %147 : vector<1x6x1xf32> to vector<2x6x256xf32>
    %171 = arith.mulf %164, %170 : vector<2x6x256xf32>
    %cst_79 = arith.constant dense<0.000000e+00> : vector<2x256xf32>
    %172 = vector.multi_reduction <add>, %171, %cst_79 [1] : vector<2x6x256xf32> to vector<2x256xf32>
    %173 = vector.shape_cast %172 : vector<2x256xf32> to vector<2x1x256xf32>
    %174 = arith.fptosi %173 : vector<2x1x256xf32> to vector<2x1x256xi32>
    %c0_80 = arith.constant 0 : index
    %c0_81 = arith.constant 0 : index
    %c0_82 = arith.constant 0 : index
    %175 = vector.load %arg4[%c0_80, %c0_81, %c0_82] : memref<2x1x256xi32, #tpu.memory_space<vmem>>, vector<2x1x256xi32>
    tpu.vector_store %arg4[%c0_80, %c0_81, %c0_82], %174 {strides = array<i32>} : memref<2x1x256xi32, #tpu.memory_space<vmem>>, vector<2x1x256xi32>,
    %176 = arith.subf %155, %168 : vector<2x6x256xf32>
    %177 = arith.mulf %176, %176 : vector<2x6x256xf32>
    %cst_83 = arith.constant dense<0.000000e+00> : vector<2x6xf32>
    %178 = vector.multi_reduction <add>, %177, %cst_83 [2] : vector<2x6x256xf32> to vector<2x6xf32>
    %179 = vector.shape_cast %178 : vector<2x6xf32> to vector<2x6x1xf32>
    %cst_84 = arith.constant dense<0.000000e+00> : vector<2x1xf32>
    %180 = vector.multi_reduction <add>, %179, %cst_84 [1] : vector<2x6x1xf32> to vector<2x1xf32>
    %181 = vector.shape_cast %180 : vector<2x1xf32> to vector<2x1x1xf32>
    %cst_85 = arith.constant dense<0.000000e+00> : vector<1x1xf32>
    %182 = vector.multi_reduction <add>, %181, %cst_85 [0] : vector<2x1x1xf32> to vector<1x1xf32>
    %183 = vector.shape_cast %182 : vector<1x1xf32> to vector<1x1x1xf32>
    %c0_86 = arith.constant 0 : index
    %c0_87 = arith.constant 0 : index
    %c0_88 = arith.constant 0 : index
    %c0_89 = arith.constant 0 : index
    %184 = vector.load %arg5[%c0_86, %c0_87, %c0_88, %c0_89] : memref<1x1x1x1xf32, #tpu.memory_space<vmem>>, vector<1x1x1x1xf32>
    %185 = vector.shape_cast %184 : vector<1x1x1x1xf32> to vector<1x1x1xf32>
    %186 = vector.shape_cast %183 : vector<1x1x1xf32> to vector<1x1x1x1xf32>
    tpu.vector_store %arg5[%c0_86, %c0_87, %c0_88, %c0_89], %186 {strides = array<i32>} : memref<1x1x1x1xf32, #tpu.memory_space<vmem>>, vector<1x1x1x1xf32>,
    return
  }
  func.func @transform_0(%arg0: i32, %arg1: i32) -> (i32, i32, i32) {
    %c0_i32 = arith.constant 0 : i32
    %c0_i32_0 = arith.constant 0 : i32
    return %arg0, %c0_i32, %arg1 : i32, i32, i32
  }
  func.func @transform_1(%arg0: i32, %arg1: i32) -> (i32, i32, i32) {
    %c0_i32 = arith.constant 0 : i32
    %c0_i32_0 = arith.constant 0 : i32
    return %arg0, %c0_i32, %arg1 : i32, i32, i32
  }
  func.func @transform_2(%arg0: i32, %arg1: i32) -> (i32, i32, i32) {
    %c0_i32 = arith.constant 0 : i32
    %c0_i32_0 = arith.constant 0 : i32
    return %arg0, %c0_i32, %arg1 : i32, i32, i32
  }
  func.func @transform_3(%arg0: i32, %arg1: i32) -> (i32, i32, i32, i32) {
    %c0_i32 = arith.constant 0 : i32
    %c0_i32_0 = arith.constant 0 : i32
    %c0_i32_1 = arith.constant 0 : i32
    return %arg0, %arg1, %c0_i32, %c0_i32_0 : i32, i32, i32, i32
  }
}

</mosaic_0001>

<bundles_post_ra>
// kernel: tpu_custom_call.1
= control target key start
LH: loop header
LB: loop body
LE: loop exit
PB: predicated region body
PF: predicated region fallthrough
CT: control target
= control target key end

     0   :  { %9 = vsyncpa [#allocation3], 0  ;;  %v13_v0 = vlaneseq  ;;  %s516_s0 = inlined_call_operand.vmem [shape: f32[2,6,256], index: 0, kind: input, shape index: {}]   ;;  %s517_s1 = inlined_call_operand.vmem [shape: f32[2,6,256], index: 1, kind: output, shape index: {0}]   ;;  %s518_s2 = inlined_call_operand.hbm [shape: s32[2,1,256], index: 2, kind: output, shape index: {1}]   ;;  %s519_s3 = inlined_call_operand.hbm [shape: f32[1,1,1,1], index: 3, kind: output, shape index: {2}]  }
   0x2   :  { %v380_v1 = vshrl.u32 %v13_v0, 7 }
   0x3   :  { %10 = vsyncpa [#allocation5], 0  ;;  %v348_v2 = vmov 0.14369535   ;;  %v349_v5 = vmov 3.5035  }
   0x4   :  { %vm15_vm0 = vcmp.eq.s32.totalorder %v380_v1, 2  ;;  %vm17_vm1 = vcmp.eq.s32.totalorder %v380_v1, 3  ;;  %vm19_vm2 = vcmp.eq.s32.totalorder %v380_v1, 4  ;;  %vm21_vm3 = vcmp.eq.s32.totalorder %v380_v1, 5  ;;  %v48_v7 = vld [vmem:[%s516_s0] sm:$0x3f] }
   0x5   :  { %v16_v3 = vsel %vm15_vm0, 0.20252444, %v348_v2  ;;  %v23_v6 = vsel %vm15_vm0, 2.5025, %v349_v5  ;;  %v49_v9 = vld [vmem:[%s516_s0 + $0x8] sm:$0x3f] }
   0x6   :  { %v18_v4 = vsel %vm17_vm1, 0.0, %v16_v3  ;;  %v24_v11 = vsel %vm17_vm1, 2.002, %v23_v6  ;;  %vm42_vm4 = vcmp.eq.s32.totalorder %v380_v1, 1  ;;  %v350_v13 = vmov 1.0   ;;  %s191_s30 = sshll.u32 %s518_s2, 4  ;;  %s192_s30 = int_to_ptr.hbm [resolvable:$true] %s191_s30 }
   0x7   :  { %v20_v8 = vsel %vm19_vm2, 0.0, %v18_v4  ;;  %v43_v14 = vsel %vm42_vm4, 8.0, %v350_v13  ;;  %v50_v16 = vld [vmem:[%s516_s0 + $0x10] sm:$0x3f]  ;;  %v51_v17 = vld [vmem:[%s516_s0 + $0x18] sm:$0x3f] }
   0x8   :  { %v22_v10 = vsel %vm21_vm3, 0.346199, %v20_v8  ;;  %v351_v18 = vmov 0.5   ;;  %v44_v20 = vsel %vm15_vm0, 64.0, %v43_v14  ;;  %v25_v21 = vsel %vm19_vm2, 2.002, %v24_v11 }
   0x9   :  { %v52_v12 = vadd.f32 %v48_v7, %v22_v10  ;;  %v53_v15 = vadd.f32 %v49_v9, %v22_v10  ;;  %v27_v19 = vsel %vm17_vm1, 0.0, %v351_v18  ;;  %v352_v22 = vmov 4.0   ;;  %s356_s4 = smov 32   ;;  %s357_s5 = smov 2  }
   0xa   :  { %v30_v23 = vsel %vm15_vm0, 3.0, %v352_v22  ;;  %v45_v24 = vsel %vm17_vm1, 384.0, %v44_v20  ;;  %v54_v26 = vadd.f32 %v50_v16, %v22_v10  ;;  %v55_v27 = vadd.f32 %v51_v17, %v22_v10  ;;  %s358_s2 = smov [#allocation4]   ;;  %s205_s9 = sshll.u32 %s519_s3, 4  ;;  %s206_s9 = int_to_ptr.hbm [resolvable:$true] %s205_s9 }
   0xb   :  { %288 = vtanh.f32 %v52_v12  ;;  %v46_v25 = vsel %vm19_vm2, 1920.0, %v45_v24  ;;  %v28_v28 = vsel %vm19_vm2, 0.0, %v27_v19  ;;  %v26_v30 = vsel %vm21_vm3, 1.5015, %v25_v21  ;;  %s203_s6 = sshll.u32 %s358_s2, 4  ;;  %s204_s6 = int_to_ptr.vmem [resolvable:$true] %s203_s6 }
   0xc   :  { %290 = vtanh.f32 %v53_v15  ;;  %v427_v29 = vsel %vm21_vm3, 9600.0, %v46_v25  ;;  %v31_v31 = vsel %vm17_vm1, 2.0, %v30_v23  ;;  %v29_v33 = vsel %vm21_vm3, 0.5, %v28_v28 }
   0xd   :  { %292 = vtanh.f32 %v54_v26  ;;  %v32_v35 = vsel %vm19_vm2, 2.0, %v31_v31  ;;  %v353_v47 = vmov 7.0   ;;  %v354_v53 = vmov 0.25  }
   0xe   :  { %294 = vtanh.f32 %v55_v27  ;;  %v33_v40 = vsel %vm21_vm3, 2.0, %v32_v35  ;;  %v38_v48 = vsel %vm15_vm0, 5.0, %v353_v47  ;;  %v34_v54 = vsel %vm15_vm0, 0.33333334, %v354_v53 }
   0xf   :  { %v39_v58 = vsel %vm17_vm1, 4.0, %v38_v48  ;;  %v35_v3 = vsel %vm17_vm1, 0.5, %v34_v54  ;;  %vm104_vm9 = vcmask 1045504   ;;  %vm139_vm14 = vcmask 1040384  }
  0x10   :  { %v40_v7 = vsel %vm19_vm2, 4.0, %v39_v58  ;;  %v36_v19 = vsel %vm19_vm2, 0.5, %v35_v3  ;;  %vm144_vm15 = vcmp.lt.s32.totalorder %v13_v0, 256  ;;  %vm181_vm0 = vcmask 0  }
  0x11   :  { %v289_v32 = vpop.eup %288  ;;  %v41_v23 = vsel %vm21_vm3, 3.0, %v40_v7 }
  0x12   :  { %v291_v34 = vpop.eup %290  ;;  %v60_v36 = vmul.f32 %v289_v32, %v26_v30 }
  0x13   :  { %v61_v37 = vmul.f32 %v291_v34, %v26_v30  ;;  %v293_v39 = vpop.eup %292 }
  0x14   :  { %v437_v38 = vsub.f32 %v60_v36, %v29_v33  ;;  %v295_v42 = vpop.eup %294  ;;  %v62_v44 = vmul.f32 %v293_v39, %v26_v30 }
  0x15   :  { %v441_v41 = vsub.f32 %v61_v37, %v29_v33  ;;  %v63_v46 = vmul.f32 %v295_v42, %v26_v30  ;;  %v37_v30 = vsel %vm21_vm3, 0.5, %v36_v19 }
  0x16   :  { %v68_v43 = vadd.f32 1.0, %v437_v38  ;;  %v447_v50 = vsub.f32 %v62_v44, %v29_v33 }
  0x17   :  { %v69_v45 = vadd.f32 1.0, %v441_v41  ;;  %v449_v52 = vsub.f32 %v63_v46, %v29_v33 }
  0x18   :  { %v72_v49 = vmul.f32 %v68_v43, %v33_v40  ;;  %v70_v57 = vadd.f32 1.0, %v447_v50 }
  0x19   :  { %v73_v51 = vmul.f32 %v69_v45, %v33_v40  ;;  %v71_v61 = vadd.f32 1.0, %v449_v52 }
  0x1a   :  { %v225_v55 = vand.u32 2147483647, %v72_v49  ;;  %v227_v56 = vcvt.f32.s32 %v72_v49  ;;  %v230_v63 = vand.u32 2147483648, %v72_v49  ;;  %v74_v2 = vmul.f32 %v70_v57, %v33_v40 }
  0x1b   :  { %v233_v59 = vand.u32 2147483647, %v73_v51  ;;  %v235_v60 = vcvt.f32.s32 %v73_v51  ;;  %v238_v5 = vand.u32 2147483648, %v73_v51  ;;  %v75_v6 = vmul.f32 %v71_v61, %v33_v40 }
  0x1c   :  { %v228_v62 = vcvt.s32.f32 %v227_v56  ;;  %vm461_vm5 = vcmp.lt.f32.partialorder %v225_v55, 8388608.0  ;;  %v243_v10 = vcvt.f32.s32 %v74_v2  ;;  %v241_v13 = vand.u32 2147483647, %v74_v2 }
  0x1d   :  { %v236_v4 = vcvt.s32.f32 %v235_v60  ;;  %vm465_vm6 = vcmp.lt.f32.partialorder %v233_v59, 8388608.0  ;;  %v251_v14 = vcvt.f32.s32 %v75_v6  ;;  %v246_v17 = vand.u32 2147483648, %v74_v2 }
  0x1e   :  { %v229_v9 = vand.u32 2147483647, %v228_v62  ;;  %v244_v16 = vcvt.s32.f32 %v243_v10  ;;  %v249_v18 = vand.u32 2147483647, %v75_v6  ;;  %v254_v22 = vand.u32 2147483648, %v75_v6 }
  0x1f   :  { %v237_v12 = vand.u32 2147483647, %v236_v4  ;;  %v252_v21 = vcvt.s32.f32 %v251_v14  ;;  %vm242_vm7 = vcmp.lt.f32.partialorder %v241_v13, 8388608.0 }
  0x20   :  { %v231_v15 = vor.u32 %v230_v63, %v229_v9  ;;  %v245_v25 = vand.u32 2147483647, %v244_v16  ;;  %vm250_vm8 = vcmp.lt.f32.partialorder %v249_v18, 8388608.0 }
  0x21   :  { %v239_v20 = vor.u32 %v238_v5, %v237_v12  ;;  %v253_v28 = vand.u32 2147483647, %v252_v21 }
  0x22   :  { %v232_v24 = vsel %vm461_vm5, %v231_v15, %v72_v49  ;;  %v247_v32 = vor.u32 %v246_v17, %v245_v25 }
  0x23   :  { %v240_v26 = vsel %vm465_vm6, %v239_v20, %v73_v51  ;;  %v80_v27 = vmax.f32 %v232_v24, 0.0  ;;  %v255_v34 = vor.u32 %v254_v22, %v253_v28 }
  0x24   :  { %v81_v31 = vmax.f32 %v240_v26, 0.0  ;;  %v248_v36 = vsel %vm242_vm7, %v247_v32, %v74_v2 }
  0x25   :  { %v84_v33 = vmin.f32 %v41_v23, %v80_v27  ;;  %v256_v40 = vsel %vm250_vm8, %v255_v34, %v75_v6  ;;  %v82_v42 = vmax.f32 %v248_v36, 0.0 }
  0x26   :  { %v85_v35 = vmin.f32 %v41_v23, %v81_v31  ;;  %v83_v45 = vmax.f32 %v256_v40, 0.0 }
  0x27   :  { %v88_v37 = vmul.f32 %v84_v33, %v37_v30  ;;  %v100_v39 = vmul.f32 %v84_v33, %v427_v29  ;;  %v86_v47 = vmin.f32 %v41_v23, %v82_v42 }
  0x28   :  { %v89_v43 = vmul.f32 %v85_v35, %v37_v30  ;;  %v101_v44 = vmul.f32 %v85_v35, %v427_v29  ;;  %v87_v48 = vmin.f32 %v41_v23, %v83_v45 }
  0x29   :  { %v221_v46 = vadd.f32 -1.0, %v88_v37  ;;  %v90_v51 = vmul.f32 %v86_v47, %v37_v30  ;;  %v102_v53 = vmul.f32 %v86_v47, %v427_v29  ;;  %v105_v7 = vsel %vm104_vm9, %v100_v39, 0.0 }
  0x2a   :  { %v222_v1 = vadd.f32 -1.0, %v89_v43  ;;  %v91_v55 = vmul.f32 %v87_v48, %v37_v30  ;;  %v103_v56 = vmul.f32 %v87_v48, %v427_v29 }
  0x2b   :  { %v148_v49 = vsub.f32 %v437_v38, %v221_v46  ;;  %96 = vst [vmem:[%s517_s1] sm:$0x3f] %v221_v46  ;;  %v223_v58 = vadd.f32 -1.0, %v90_v51  ;;  %v119_v8 = vsel %vm104_vm9, %v102_v53, 0.0 }
  0x2c   :  { %97 = vst [vmem:[%s517_s1 + $0x8] sm:$0x3f] %v222_v1  ;;  %v149_v54 = vsub.f32 %v441_v41, %v222_v1  ;;  %v224_v59 = vadd.f32 -1.0, %v91_v55  ;;  %v126_v6 = vsel %vm104_vm9, %v103_v56, 0.0  ;;  %v120_v11 = vrot.slane %v119_v8, 4 }
  0x2d   :  { %v152_v57 = vmul.f32 %v148_v49, %v148_v49  ;;  %98 = vst [vmem:[%s517_s1 + $0x10] sm:$0x3f] %v223_v58  ;;  %v150_v61 = vsub.f32 %v447_v50, %v223_v58  ;;  %v112_v50 = vsel %vm104_vm9, %v101_v44, 0.0  ;;  %v127_v10 = vrot.slane %v126_v6, 4 }
  0x2e   :  { %v153_v38 = vmul.f32 %v149_v54, %v149_v54  ;;  %99 = vst [vmem:[%s517_s1 + $0x18] sm:$0x3f] %v224_v59  ;;  %v151_v29 = vsub.f32 %v449_v52, %v224_v59  ;;  %v113_v9 = vrot.slane %v112_v50, 4  ;;  %v106_v52 = vrot.slane %v105_v7, 4  ;;  %s355_s1 = smov [#allocation2]  }
  0x2f   :  { %v156_v60 = vsel %vm104_vm9, %v152_v57, 0.0  ;;  %v154_v63 = vmul.f32 %v150_v61, %v150_v61  ;;  %v128_v13 = vadd.f32 %v127_v10, %v126_v6  ;;  %v121_v15 = vadd.f32 %v120_v11, %v119_v8  ;;  %s189_s27 = sshll.u32 %s355_s1, 4  ;;  %s190_s27 = int_to_ptr.vmem [resolvable:$true] %s189_s27 }
  0x30   :  { %v157_v62 = vsel %vm104_vm9, %v153_v38, 0.0  ;;  %v155_v2 = vmul.f32 %v151_v29, %v151_v29  ;;  %v114_v12 = vadd.f32 %v113_v9, %v112_v50  ;;  %v107_v14 = vadd.f32 %v106_v52, %v105_v7 }
  0x31   :  { %v158_v41 = vadd.f32 %v157_v62, %v156_v60  ;;  %v161_v3 = vsel %vm104_vm9, %v154_v63, 0.0  ;;  %v129_v17 = vrot.slane %v128_v13, 2  ;;  %v122_v19 = vrot.slane %v121_v15, 2 }
  0x32   :  { %v162_v4 = vsel %vm104_vm9, %v155_v2, 0.0  ;;  %v115_v16 = vrot.slane %v114_v12, 2  ;;  %v108_v18 = vrot.slane %v107_v14, 2 }
  0x33   :  { %159 = vadd.xlane.f32.xlu0 %v158_v41  ;;  %v163_v5 = vadd.f32 %v162_v4, %v161_v3  ;;  %v130_v21 = vadd.f32 %v129_v17, %v128_v13  ;;  %v123_v23 = vadd.f32 %v122_v19, %v121_v15 }
  0x34   :  { %v116_v20 = vadd.f32 %v115_v16, %v114_v12  ;;  %v109_v22 = vadd.f32 %v108_v18, %v107_v14 }
  0x35   :  { %v131_v25 = vrot.slane %v130_v21, 1  ;;  %v124_v27 = vrot.slane %v123_v23, 1 }
  0x36   :  { %v117_v24 = vrot.slane %v116_v20, 1  ;;  %v110_v26 = vrot.slane %v109_v22, 1 }
  0x37   :  { %v132_v30 = vadd.f32 %v131_v25, %v130_v21  ;;  %v125_v32 = vadd.f32 %v124_v27, %v123_v23 }
  0x38   :  { %v118_v28 = vadd.f32 %v117_v24, %v116_v20  ;;  %v111_v31 = vadd.f32 %v110_v26, %v109_v22 }
  0x39   :  { %v273_v35 = vceil.f32 %v132_v30  ;;  %v274_v36 = vfloor.f32 %v132_v30  ;;  %vm272_vm11 = vcmp.lt.s32.totalorder %v132_v30, 0  ;;  %v268_v42 = vceil.f32 %v125_v32 }
  0x3a   :  { %v263_v33 = vceil.f32 %v118_v28  ;;  %v264_v34 = vfloor.f32 %v118_v28  ;;  %vm262_vm10 = vcmp.lt.s32.totalorder %v118_v28, 0  ;;  %v258_v37 = vceil.f32 %v111_v31 }
  0x3b   :  { %164 = vadd.xlane.f32.xlu0 %v163_v5  ;;  %v259_v39 = vfloor.f32 %v111_v31  ;;  %vm257_vm12 = vcmp.lt.s32.totalorder %v111_v31, 0  ;;  %vm267_vm13 = vcmp.lt.s32.totalorder %v125_v32, 0  ;;  %v269_v44 = vfloor.f32 %v125_v32 }
  0x3c   :  { %v265_v40 = vsel %vm262_vm10, %v263_v33, %v264_v34  ;;  %v275_v46 = vsel %vm272_vm11, %v273_v35, %v274_v36 }
  0x3d   :  { %v266_v43 = vcvt.f32.s32 %v265_v40  ;;  %v260_v45 = vsel %vm257_vm12, %v258_v37, %v259_v39  ;;  %v270_v1 = vsel %vm267_vm13, %v268_v42, %v269_v44  ;;  %v276_v48 = vcvt.f32.s32 %v275_v46 }
  0x3e   :  { %v261_v47 = vcvt.f32.s32 %v260_v45  ;;  %v271_v51 = vcvt.f32.s32 %v270_v1 }
  0x3f   :  { %v137_v49 = vrot.slane %v266_v43, 7  ;;  %v138_v53 = vrot.slane %v276_v48, 7 }
  0x41   :  { %v140_v54 = vsel %vm139_vm14, %v261_v47, %v137_v49  ;;  %v141_v55 = vsel %vm139_vm14, %v271_v51, %v138_v53 }
  0x42   :  { %146 = vst.msk [vmem:[#allocation2] sm:$0x3] %vm144_vm15, %v140_v54 }
  0x43   :  { %147 = vst.msk [vmem:[#allocation2 + $0x2] sm:$0x3] %vm144_vm15, %v141_v55 }
  0x44   :  { %197 = dma.vmem_to_hbm [thread:$0]  %s190_s27, 64, %s192_s30, [#allocation3], %s356_s4, %s356_s4, %s357_s5  }
  0xa6   :  { %v160_v0 = vpop.xlane.xlu0 %159 }
  0xa7   :  { %v166_v56 = vsel %vm104_vm9, %v160_v0, 0.0 }
  0xa8   :  { %v167_v57 = vrot.slane %v166_v56, 4 }
  0xaa   :  { %v168_v58 = vadd.f32 %v167_v57, %v166_v56 }
  0xac   :  { %v169_v38 = vrot.slane %v168_v58, 2 }
  0xae   :  { %v165_v59 = vpop.xlane.xlu0 %164  ;;  %v170_v62 = vadd.f32 %v169_v38, %v168_v58 }
  0xaf   :  { %v173_v60 = vsel %vm104_vm9, %v165_v59, 0.0 }
  0xb0   :  { %v174_v61 = vrot.slane %v173_v60, 4  ;;  %v171_v63 = vrot.slane %v170_v62, 1 }
  0xb2   :  { %v175_v41 = vadd.f32 %v174_v61, %v173_v60  ;;  %v172_v4 = vadd.f32 %v171_v63, %v170_v62 }
  0xb4   :  { %v176_v29 = vrot.slane %v175_v41, 2 }
  0xb6   :  { %v177_v2 = vadd.f32 %v176_v29, %v175_v41 }
  0xb8   :  { %v178_v3 = vrot.slane %v177_v2, 1 }
  0xba   :  { %v179_v5 = vadd.f32 %v178_v3, %v177_v2 }
  0xbc   :  { %v180_v50 = vadd.f32 %v179_v5, %v172_v4 }
  0xbe   :  { %182 = vst.msk [vmem:[#allocation4] sm:$0x1] %vm181_vm0, %v180_v50 }
  0xbf   :  { %208 = dma.vmem_to_hbm [thread:$0]  %s204_s6, 16, %s206_s9, [#allocation5]  }
  0xc0   :  { %344 = dma.done.wait [#allocation3], 64  }
  0xc1   :  { %345 = vsyncadd [#allocation3], 4294967232 }
  0xc2   :  { %346 = dma.done.wait [#allocation5], 16  }
  0xc3   :  { %347 = vsyncadd [#allocation5], 4294967280 }
  0xc4   :  { %219 = vsyncpa [#allocation3], 1 }
  0xc5   :  { %220 = vsyncpa [#allocation5], 1 }

</bundles_post_ra>
